<compile_context>
chip_gen: v5e
topology: v5e:2x2
jax: 0.10.0
libtpu: 0.0.40
codegen_flags: <defaults>
</compile_context>

<pallas_src>
import jax
import jax.numpy as jnp
import numpy as np
from jax.experimental import pallas as pl
from jax.experimental.pallas import tpu as pltpu

EPS = 1e-5


# --------------------------------- kernels -----------------------------------

def _conv_a_stats_kernel(x_ref, w_ref, y_ref, stats_ref):
    """conv3x3 (stride 1, pad 1) for one image + fused BN statistics.

    x_ref:     (1, H+2, W*Cin)   H-padded, lane-packed input image
    w_ref:     (3, W*Cin, W*Cout) banded packed conv weight (one slab per ky)
    y_ref:     (1, H, W*Cout)    un-normalized conv output
    stats_ref: (2, W*Cout)       carried [sum ; sum-of-squares] over (N, H)
    """
    n = pl.program_id(0)

    @pl.when(n == 0)
    def _init():
        stats_ref[...] = jnp.zeros_like(stats_ref)

    h_out = y_ref.shape[1]
    xp = x_ref[0]                                            # (H+2, W*Cin)
    acc = jnp.dot(xp[0:h_out, :], w_ref[0], preferred_element_type=jnp.float32)
    for ky in range(1, 3):
        acc = acc + jnp.dot(xp[ky:ky + h_out, :], w_ref[ky],
                            preferred_element_type=jnp.float32)
    y_ref[0] = acc
    stats_ref[0:1, :] += jnp.sum(acc, axis=0, keepdims=True)
    stats_ref[1:2, :] += jnp.sum(acc * acc, axis=0, keepdims=True)


def _bn_relu_conv_b_stats_kernel(ya_ref, scale_ref, shift_ref, w_ref,
                                 y_ref, stats_ref, ypad_ref):
    """bn_a (fused affine) + relu + conv3x3 + fused BN_b statistics.

    ya_ref:    (1, H, W*C)    un-normalized conv_a output for one image
    scale_ref: (1, W*C)       packed gamma_a * rsqrt(var_a + eps)
    shift_ref: (1, W*C)       packed beta_a - mean_a * scale_a
    w_ref:     (3, W*C, W*C)  banded packed conv_b weight
    y_ref:     (1, H, W*C)    un-normalized conv_b output
    stats_ref: (2, W*C)       carried [sum ; sum-of-squares]
    ypad_ref:  (H+2, W*C)     VMEM scratch, zero H halo, interior rewritten
    """
    n = pl.program_id(0)
    h_out = y_ref.shape[1]

    @pl.when(n == 0)
    def _init():
        stats_ref[...] = jnp.zeros_like(stats_ref)
        ypad_ref[...] = jnp.zeros_like(ypad_ref)   # halo rows stay zero forever

    # BN_a affine + ReLU fused, written into the interior of the padded scratch.
    act = jnp.maximum(ya_ref[0] * scale_ref[...] + shift_ref[...], 0.0)
    ypad_ref[1:h_out + 1, :] = act

    yp = ypad_ref[...]                                       # (H+2, W*C)
    acc = jnp.dot(yp[0:h_out, :], w_ref[0], preferred_element_type=jnp.float32)
    for ky in range(1, 3):
        acc = acc + jnp.dot(yp[ky:ky + h_out, :], w_ref[ky],
                            preferred_element_type=jnp.float32)
    y_ref[0] = acc
    stats_ref[0:1, :] += jnp.sum(acc, axis=0, keepdims=True)
    stats_ref[1:2, :] += jnp.sum(acc * acc, axis=0, keepdims=True)


def _bn_residual_relu_kernel(x_ref, yb_ref, scale_ref, shift_ref, out_ref):
    """out = relu(x + bn_b(conv_b_out)); fully elementwise, lane-dense."""
    out_ref[0] = jnp.maximum(
        x_ref[0] + yb_ref[0] * scale_ref[...] + shift_ref[...], 0.0)


# ----------------------------- wrapper helpers --------------------------------

def _pack_conv_weight(w_oihw, width):
    """OIHW 3x3 weight -> (3, width*Cin, width*Cout) banded matmul operands.

    packed[ky][wi*Cin + ci, wo*Cout + co] = w[co, ci, ky, kx]  where
        wi = wo + kx - 1, entries outside [0, width) are dropped (W padding
        is folded into the weight, so the activation never needs a W halo).
    """
    w_hwio = jnp.transpose(w_oihw, (2, 3, 1, 0)).astype(jnp.float32)  # (3,3,Ci,Co)
    cin, cout = w_hwio.shape[2], w_hwio.shape[3]
    slabs = []
    for ky in range(3):
        acc = jnp.zeros((width * cin, width * cout), jnp.float32)
        for kx in range(3):
            band = jnp.eye(width, width, k=1 - kx, dtype=jnp.float32)  # [wi, wo]
            acc = acc + jnp.kron(band, w_hwio[ky, kx])
        slabs.append(acc)
    return jnp.stack(slabs, axis=0)


def _bn_affine_packed(stats, gamma, beta, count, width):
    """Fold batch stats + gamma/beta into packed (1, width*C) scale/shift."""
    c = gamma.shape[0]
    s = stats.reshape(2, width, c).sum(axis=1)              # (2, C)
    mean = s[0] / count
    var = s[1] / count - mean * mean                        # biased batch var
    scale = gamma.astype(jnp.float32) * jax.lax.rsqrt(var + EPS)
    shift = beta.astype(jnp.float32) - mean * scale
    scale_p = jnp.tile(scale.reshape(1, c), (1, width))     # (1, W*C)
    shift_p = jnp.tile(shift.reshape(1, c), (1, width))
    return scale_p, shift_p


# --------------------------------- wrapper ------------------------------------

def resnet_basicblock(x_nchw, wa_oihw, gamma_a, beta_a, wb_oihw, gamma_b, beta_b,
                      stride=1):
    assert stride == 1, "downsample=None requires stride=1 for the residual add"
    n, cin, h, w = x_nchw.shape
    planes = wa_oihw.shape[0]
    assert cin == planes, "downsample=None requires inplanes == planes"
    c = planes
    lanes = w * c                       # packed lane width (W folded into C)
    count = float(n * h * w)            # elements per channel for BN stats

    # NCHW -> lane-dense packed (N, H, W*C); pad the H halo ONCE in the wrapper.
    # TODO(synk): an NHWC-native caller could skip this boundary transpose.
    x_packed = jnp.transpose(x_nchw, (0, 2, 3, 1)).astype(jnp.float32) \
                  .reshape(n, h, lanes)
    x_hpad = jnp.pad(x_packed, ((0, 0), (1, 1), (0, 0)))

    wbig_a = _pack_conv_weight(wa_oihw, w)          # (3, W*Cin, W*C)
    wbig_b = _pack_conv_weight(wb_oihw, w)          # (3, W*C,   W*C)

    # ---------------- pass 1: conv_a + BN_a statistics ------------------------
    ya, stats_a = pl.pallas_call(
        _conv_a_stats_kernel,
        grid=(n,),
        in_specs=[
            pl.BlockSpec((1, h + 2, lanes), lambda i: (i, 0, 0)),
            pl.BlockSpec((3, lanes, lanes), lambda i: (0, 0, 0)),
        ],
        out_specs=(
            pl.BlockSpec((1, h, lanes), lambda i: (i, 0, 0)),
            pl.BlockSpec((2, lanes), lambda i: (0, 0)),      # carried accumulator
        ),
        out_shape=(
            jax.ShapeDtypeStruct((n, h, lanes), jnp.float32),
            jax.ShapeDtypeStruct((2, lanes), jnp.float32),
        ),
        compiler_params=pltpu.CompilerParams(
            dimension_semantics=("arbitrary",)),             # stats are carried
    )(x_hpad, wbig_a)

    scale_a, shift_a = _bn_affine_packed(stats_a, gamma_a, beta_a, count, w)

    # ---------------- pass 2: bn_a + relu + conv_b + BN_b statistics ----------
    yb, stats_b = pl.pallas_call(
        _bn_relu_conv_b_stats_kernel,
        grid=(n,),
        in_specs=[
            pl.BlockSpec((1, h, lanes), lambda i: (i, 0, 0)),
            pl.BlockSpec((1, lanes), lambda i: (0, 0)),
            pl.BlockSpec((1, lanes), lambda i: (0, 0)),
            pl.BlockSpec((3, lanes, lanes), lambda i: (0, 0, 0)),
        ],
        out_specs=(
            pl.BlockSpec((1, h, lanes), lambda i: (i, 0, 0)),
            pl.BlockSpec((2, lanes), lambda i: (0, 0)),
        ),
        out_shape=(
            jax.ShapeDtypeStruct((n, h, lanes), jnp.float32),
            jax.ShapeDtypeStruct((2, lanes), jnp.float32),
        ),
        scratch_shapes=[pltpu.VMEM((h + 2, lanes), jnp.float32)],
        compiler_params=pltpu.CompilerParams(
            dimension_semantics=("arbitrary",)),
    )(ya, scale_a, shift_a, wbig_b)

    scale_b, shift_b = _bn_affine_packed(stats_b, gamma_b, beta_b, count, w)

    # ---------------- pass 3: bn_b + residual add + relu ----------------------
    out_packed = pl.pallas_call(
        _bn_residual_relu_kernel,
        grid=(n,),
        in_specs=[
            pl.BlockSpec((1, h, lanes), lambda i: (i, 0, 0)),
            pl.BlockSpec((1, h, lanes), lambda i: (i, 0, 0)),
            pl.BlockSpec((1, lanes), lambda i: (0, 0)),
            pl.BlockSpec((1, lanes), lambda i: (0, 0)),
        ],
        out_specs=pl.BlockSpec((1, h, lanes), lambda i: (i, 0, 0)),
        out_shape=jax.ShapeDtypeStruct((n, h, lanes), jnp.float32),
        compiler_params=pltpu.CompilerParams(
            dimension_semantics=("parallel",)),              # per-image independent
    )(x_packed, yb, scale_b, shift_b)

    # packed (N, H, W*C) -> NCHW
    out = out_packed.reshape(n, h, w, c)
    return jnp.transpose(out, (0, 3, 1, 2))


# ------------------------------ pure-JAX reference ----------------------------

def _reference(x_nchw, wa, ga, ba, wb, gb, bb):
    def conv(x, w):
        return jax.lax.conv_general_dilated(
            x, w, (1, 1), ((1, 1), (1, 1)),
            dimension_numbers=("NCHW", "OIHW", "NCHW"))

    def bn(x, g, b):
        mean = jnp.mean(x, axis=(0, 2, 3), keepdims=True)
        var = jnp.mean((x - mean) ** 2, axis=(0, 2, 3), keepdims=True)
        return (x - mean) / jnp.sqrt(var + EPS) * g.reshape(1, -1, 1, 1) \
            + b.reshape(1, -1, 1, 1)

    y = jax.nn.relu(bn(conv(x_nchw, wa), ga, ba))
    y = bn(conv(y, wb), gb, bb)
    return jax.nn.relu(x_nchw + y)


# ----------------------------------- main --------------------------------------

if __name__ == "__main__":
    inplanes, planes, stride = 4, 4, 1
    N, H, W = 2, 16, 16

    key = jax.random.PRNGKey(0)
    kx, kwa, kwb, kga, kba, kgb, kbb = jax.random.split(key, 7)

    x = jax.random.normal(kx, (N, inplanes, H, W), jnp.float32)

    # Deterministic parameter init (Kaiming-like scale for convs).
    fan_a = 3 * 3 * inplanes
    fan_b = 3 * 3 * planes
    wa = jax.random.normal(kwa, (planes, inplanes, 3, 3), jnp.float32) * np.sqrt(2.0 / fan_a)
    wb = jax.random.normal(kwb, (planes, planes, 3, 3), jnp.float32) * np.sqrt(2.0 / fan_b)
    gamma_a = 1.0 + 0.1 * jax.random.normal(kga, (planes,), jnp.float32)
    beta_a = 0.1 * jax.random.normal(kba, (planes,), jnp.float32)
    gamma_b = 1.0 + 0.1 * jax.random.normal(kgb, (planes,), jnp.float32)
    beta_b = 0.1 * jax.random.normal(kbb, (planes,), jnp.float32)

    out = resnet_basicblock(x, wa, gamma_a, beta_a, wb, gamma_b, beta_b, stride)
    out = jax.block_until_ready(out)

    ref = jax.block_until_ready(_reference(x, wa, gamma_a, beta_a, wb, gamma_b, beta_b))
    np.testing.assert_allclose(np.asarray(out), np.asarray(ref), atol=1e-2, rtol=1e-2)

    print("KERNEL_OK")
</pallas_src>

<mosaic_0001>
module attributes {stable_mosaic.version = 11 : i64} {
  func.func @_conv_a_stats_kernel(%arg0: i32, %arg1: memref<1x18x64xf32, #tpu.memory_space<vmem>>, %arg2: memref<3x64x64xf32, #tpu.memory_space<vmem>>, %arg3: memref<1x16x64xf32, #tpu.memory_space<vmem>>, %arg4: memref<2x64xf32, #tpu.memory_space<vmem>>) attributes {dimension_semantics = [#tpu.dimension_semantics<arbitrary>], iteration_bounds = array<i64: 2>, scalar_prefetch = 0 : i64, scratch_operands = 0 : i64, tpu.core_type = #tpu.core_type<tc>, window_params = [{transform_indices = @transform_0, window_bounds = array<i64: 1, 18, 64>}, {pipeline_mode = #tpu.pipeline_mode<synchronous>, transform_indices = @transform_1, window_bounds = array<i64: 3, 64, 64>}, {transform_indices = @transform_2, window_bounds = array<i64: 1, 16, 64>}, {pipeline_mode = #tpu.pipeline_mode<synchronous>, transform_indices = @transform_3, window_bounds = array<i64: 2, 64>}]} {
    %c0_i32 = arith.constant 0 : i32
    %0 = arith.cmpi eq, %arg0, %c0_i32 : i32
    %1 = arith.extui %0 : i1 to i32
    %c0_i32_0 = arith.constant 0 : i32
    %2 = arith.cmpi ne, %1, %c0_i32_0 : i32
    scf.if %2 {
      %cst_25 = arith.constant 0.000000e+00 : f32
      %33 = vector.broadcast %cst_25 : f32 to vector<2x64xf32>
      %c0_26 = arith.constant 0 : index
      %c0_27 = arith.constant 0 : index
      %34 = vector.load %arg4[%c0_26, %c0_27] : memref<2x64xf32, #tpu.memory_space<vmem>>, vector<2x64xf32>
      tpu.vector_store %arg4[%c0_26, %c0_27], %33 {strides = array<i32>} : memref<2x64xf32, #tpu.memory_space<vmem>>, vector<2x64xf32>,
    } else {
    }
    %c0 = arith.constant 0 : index
    %c0_1 = arith.constant 0 : index
    %c0_2 = arith.constant 0 : index
    %3 = vector.load %arg1[%c0, %c0_1, %c0_2] : memref<1x18x64xf32, #tpu.memory_space<vmem>>, vector<1x18x64xf32>
    %4 = vector.shape_cast %3 : vector<1x18x64xf32> to vector<18x64xf32>
    %5 = vector.extract_strided_slice %4 {offsets = [0, 0], sizes = [16, 64], strides = [1, 1]} : vector<18x64xf32> to vector<16x64xf32>
    %c0_3 = arith.constant 0 : index
    %c0_4 = arith.constant 0 : index
    %c0_5 = arith.constant 0 : index
    %6 = vector.load %arg2[%c0_3, %c0_4, %c0_5] : memref<3x64x64xf32, #tpu.memory_space<vmem>>, vector<1x64x64xf32>
    %7 = vector.shape_cast %6 : vector<1x64x64xf32> to vector<64x64xf32>
    %cst = arith.constant dense<0.000000e+00> : vector<16x64xf32>
    %8 = tpu.matmul %5, %7, %cst {dimension_numbers = #tpu.dot_dimension_numbers<[1], [0], [0], [1], [0, 0, 1, 1], [], []>} : vector<16x64xf32>, vector<64x64xf32>, vector<16x64xf32> -> vector<16x64xf32>
    %9 = vector.extract_strided_slice %4 {offsets = [1, 0], sizes = [16, 64], strides = [1, 1]} : vector<18x64xf32> to vector<16x64xf32>
    %c1 = arith.constant 1 : index
    %c0_6 = arith.constant 0 : index
    %c0_7 = arith.constant 0 : index
    %10 = vector.load %arg2[%c1, %c0_6, %c0_7] : memref<3x64x64xf32, #tpu.memory_space<vmem>>, vector<1x64x64xf32>
    %11 = vector.shape_cast %10 : vector<1x64x64xf32> to vector<64x64xf32>
    %cst_8 = arith.constant dense<0.000000e+00> : vector<16x64xf32>
    %12 = tpu.matmul %9, %11, %cst_8 {dimension_numbers = #tpu.dot_dimension_numbers<[1], [0], [0], [1], [0, 0, 1, 1], [], []>} : vector<16x64xf32>, vector<64x64xf32>, vector<16x64xf32> -> vector<16x64xf32>
    %13 = arith.addf %8, %12 : vector<16x64xf32>
    %14 = vector.extract_strided_slice %4 {offsets = [2, 0], sizes = [16, 64], strides = [1, 1]} : vector<18x64xf32> to vector<16x64xf32>
    %c2 = arith.constant 2 : index
    %c0_9 = arith.constant 0 : index
    %c0_10 = arith.constant 0 : index
    %15 = vector.load %arg2[%c2, %c0_9, %c0_10] : memref<3x64x64xf32, #tpu.memory_space<vmem>>, vector<1x64x64xf32>
    %16 = vector.shape_cast %15 : vector<1x64x64xf32> to vector<64x64xf32>
    %cst_11 = arith.constant dense<0.000000e+00> : vector<16x64xf32>
    %17 = tpu.matmul %14, %16, %cst_11 {dimension_numbers = #tpu.dot_dimension_numbers<[1], [0], [0], [1], [0, 0, 1, 1], [], []>} : vector<16x64xf32>, vector<64x64xf32>, vector<16x64xf32> -> vector<16x64xf32>
    %18 = arith.addf %13, %17 : vector<16x64xf32>
    %c0_12 = arith.constant 0 : index
    %c0_13 = arith.constant 0 : index
    %c0_14 = arith.constant 0 : index
    %19 = vector.load %arg3[%c0_12, %c0_13, %c0_14] : memref<1x16x64xf32, #tpu.memory_space<vmem>>, vector<1x16x64xf32>
    %20 = vector.shape_cast %19 : vector<1x16x64xf32> to vector<16x64xf32>
    %21 = vector.shape_cast %18 : vector<16x64xf32> to vector<1x16x64xf32>
    tpu.vector_store %arg3[%c0_12, %c0_13, %c0_14], %21 {strides = array<i32>} : memref<1x16x64xf32, #tpu.memory_space<vmem>>, vector<1x16x64xf32>,
    %c0_15 = arith.constant 0 : index
    %c0_16 = arith.constant 0 : index
    %22 = vector.load %arg4[%c0_15, %c0_16] : memref<2x64xf32, #tpu.memory_space<vmem>>, vector<1x64xf32>
    %cst_17 = arith.constant dense<0.000000e+00> : vector<64xf32>
    %23 = vector.multi_reduction <add>, %18, %cst_17 [0] : vector<16x64xf32> to vector<64xf32>
    %24 = vector.shape_cast %23 : vector<64xf32> to vector<1x64xf32>
    %25 = arith.addf %22, %24 : vector<1x64xf32>
    %c0_18 = arith.constant 0 : index
    %c0_19 = arith.constant 0 : index
    %26 = vector.load %arg4[%c0_18, %c0_19] : memref<2x64xf32, #tpu.memory_space<vmem>>, vector<1x64xf32>
    tpu.vector_store %arg4[%c0_18, %c0_19], %25 {strides = array<i32>} : memref<2x64xf32, #tpu.memory_space<vmem>>, vector<1x64xf32>,
    %c1_20 = arith.constant 1 : index
    %c0_21 = arith.constant 0 : index
    %27 = vector.load %arg4[%c1_20, %c0_21] : memref<2x64xf32, #tpu.memory_space<vmem>>, vector<1x64xf32>
    %28 = arith.mulf %18, %18 : vector<16x64xf32>
    %cst_22 = arith.constant dense<0.000000e+00> : vector<64xf32>
    %29 = vector.multi_reduction <add>, %28, %cst_22 [0] : vector<16x64xf32> to vector<64xf32>
    %30 = vector.shape_cast %29 : vector<64xf32> to vector<1x64xf32>
    %31 = arith.addf %27, %30 : vector<1x64xf32>
    %c1_23 = arith.constant 1 : index
    %c0_24 = arith.constant 0 : index
    %32 = vector.load %arg4[%c1_23, %c0_24] : memref<2x64xf32, #tpu.memory_space<vmem>>, vector<1x64xf32>
    tpu.vector_store %arg4[%c1_23, %c0_24], %31 {strides = array<i32>} : memref<2x64xf32, #tpu.memory_space<vmem>>, vector<1x64xf32>,
    return
  }
  func.func @transform_0(%arg0: i32) -> (i32, i32, i32) {
    %c0_i32 = arith.constant 0 : i32
    %c0_i32_0 = arith.constant 0 : i32
    %c0_i32_1 = arith.constant 0 : i32
    return %arg0, %c0_i32, %c0_i32_0 : i32, i32, i32
  }
  func.func @transform_1(%arg0: i32) -> (i32, i32, i32) {
    %c0_i32 = arith.constant 0 : i32
    %c0_i32_0 = arith.constant 0 : i32
    %c0_i32_1 = arith.constant 0 : i32
    %c0_i32_2 = arith.constant 0 : i32
    return %c0_i32, %c0_i32_0, %c0_i32_1 : i32, i32, i32
  }
  func.func @transform_2(%arg0: i32) -> (i32, i32, i32) {
    %c0_i32 = arith.constant 0 : i32
    %c0_i32_0 = arith.constant 0 : i32
    %c0_i32_1 = arith.constant 0 : i32
    return %arg0, %c0_i32, %c0_i32_0 : i32, i32, i32
  }
  func.func @transform_3(%arg0: i32) -> (i32, i32) {
    %c0_i32 = arith.constant 0 : i32
    %c0_i32_0 = arith.constant 0 : i32
    %c0_i32_1 = arith.constant 0 : i32
    return %c0_i32, %c0_i32_0 : i32, i32
  }
}

</mosaic_0001>

<bundles_post_ra>
// kernel: tpu_custom_call.1
= control target key start
LH: loop header
LB: loop body
LE: loop exit
PB: predicated region body
PF: predicated region fallthrough
CT: control target
= control target key end

     0   :  { %9 = vsyncpa [#allocation3], 0  ;;  %s852_s0 = inlined_call_operand.vmem [shape: f32[2,18,64], index: 0, kind: input, shape index: {}]   ;;  %s853_s1 = inlined_call_operand.hbm [shape: f32[3,64,64], index: 1, kind: input, shape index: {}]   ;;  %s854_s2 = inlined_call_operand.hbm [shape: f32[2,16,64], index: 2, kind: output, shape index: {0}]   ;;  %s855_s3 = inlined_call_operand.hbm [shape: f32[2,64], index: 3, kind: output, shape index: {1}]  }
   0x1   :  { %10 = vsyncpa [#allocation4], 0 }
   0x2   :  { %12 = vsyncpa [#allocation4 + $0x1], 0 }
   0x3   :  { %13 = vsyncpa [#allocation7], 0  ;;  %s713_s12 = smov 0   ;;  %s715_s13 = smov 0  }
   0x4   :  { %s717_s14 = smov 0   ;;  %s719_s15 = smov 0  }
   0x5 LB: > { %s734_s16 = sadd.s32 4294967295, %s684_s15   ;;  %s462_s17 = sadd.s32 4294967294, %s684_s15   ;;  %s684_s15 = sphi %s719_s15, %s861_s15   ;;  %s680_s14 = sphi %s717_s14, %s860_s14   ;;  %s676_s13 = sphi %s715_s13, %s859_s13   ;;  %s672_s12 = sphi %s713_s12, %s858_s12  }
   0x6   : > { %s738_s18 = sadd.s32 1, %s684_s15   ;;  %s73_s19 = sadd.s32 1, %s680_s14 }
   0x7   : > { %s70_s20 = ssub.s32 %s684_s15, %s738_s18  ;;  %p83_p0 = scmp.ne.s32.totalorder %s680_s14, %s676_s13 }
   0x8   : > { %p71_p1 = scmp.eq.s32.totalorder %s70_s20, 0  ;;  %p84_p2 = scmp.eq.s32.totalorder %s734_s16, 1 }
   0x9   : > { %p89_p3 = scmp.ne.s32.totalorder %s676_s13, %s672_s12  ;;  %p90_p4 = scmp.eq.s32.totalorder %s462_s17, 1 }
   0xa   : > { %s749_s21 = scalar_select %p71_p1, %s680_s14, %s73_s19  }
   0xb   : > { %p753_p5 = por %p84_p2, %p83_p0  ;;  %p757_p6 = por %p90_p4, %p89_p3 }
   0xc   : > { %p463_p7 = scmp.ge.s32.totalorder %s684_s15, 1  ;;  %p118_p8 = scmp.lt.s32.totalorder %s684_s15, 3 }
   0xd   : > { %p464_p9 = scmp.ne.s32.totalorder %s734_s16, 0  ;;  %p512_p10 = scmp.eq.s32.totalorder %s734_s16, 0 }
   0xe   : > { %p119_p11 = pnand %p463_p7, %p118_p8  ;;  %s129_s26 = sshll.u32 %s853_s1, 4  ;;  %s130_s26 = int_to_ptr.hbm [resolvable:$true] %s129_s26 }
   0xf   : > { %s686_s27 = smov [#allocation2]   ;;  %s687_s29 = smov 128  }
  0x10   : > { %p504_p12 = pneg %p119_p11  ;;  %s131_s28 = sshll.u32 %s686_s27, 4  ;;  %s132_s28 = int_to_ptr.vmem [resolvable:$true] %s131_s28 }
  0x11   : > { %s688_s30 = smov 8   ;;  %155 = sbr.rel (%p119_p11) target bundleno = 215 (0xd7), region = 28 }
  0x12   : > { %p505_p13 = pnand %p512_p10, %p504_p12 }
  0x14   : > { %507 = dma.hbm_to_vmem [thread:$0]  (!%p505_p13), %s130_s26, 3072, %s132_s28, [#allocation3], %s687_s29, %s687_s29, %s688_s30  }
  0x16   : > { %659 = dma.done.wait (%p512_p10), [#allocation3], 3072  }
  0x17   : > { %661 = vsyncadd (%p512_p10), [#allocation3], 4294964224  ;;  %s175_s4 = sand.u32 1, %s676_s13   ;;  %p180_p0 = scmp.lt.s32.totalorder %s734_s16, 1 }
  0x18   : > { %s468_s5 = sshll.u32 %s175_s4, 4 }
  0x19   : > { %s181_s6 = scalar_select %p180_p0, %s734_s16, 1 }
  0x1a   : > { %s784_s11 = scalar_lea.vmem [#allocation5], %s468_s5  ;;  %188 = sbr.rel (%p464_p9) target bundleno = 33 (0x21), region = 36 }
  0x1b   : > { %s493_s7 = smul.u32 24, %s181_s6 }
  0x1d   : > { %s782_s10 = scalar_lea.vmem %s852_s0, %s493_s7 }
  0x1f   : > { %vm189_vm0 = vcmask 517120   ;;  %v689_v0 = vmov 0.0  }
  0x20   : > { %190 = vst.msk [vmem:[#allocation6] sm:$0x3] %vm189_vm0, %v689_v0 }
  0x21 PF: > { %v283_v1 = vld [vmem:[#allocation2 + $0xb8] sm:$0xff]  ;;  %v282_v2 = vld [vmem:[#allocation2 + $0xb0] sm:$0xff]  ;;  %v281_v6 = vld [vmem:[#allocation2 + $0xa8] sm:$0xff]  ;;  %vm284_vm1 = vcmask 1045504   ;;  %vm214_vm2 = vcmask 1046528   ;;  %vm220_vm3 = vcmask 523264  }
  0x22   : > { %v210_v3 = vld [vmem:[#allocation2 + $0x78] sm:$0xff]  ;;  %302 = vmatpush.msra.mxu2 %v283_v1  ;;  %v209_v5 = vld [vmem:[#allocation2 + $0x70] sm:$0xff]  ;;  %v208_v8 = vld [vmem:[#allocation2 + $0x68] sm:$0xff]  ;;  %s484_s17 = sshll.u32 %s734_s16, 4  ;;  %s361_s25 = sshll.u32 %s784_s11, 4  ;;  %s362_s25 = int_to_ptr.vmem [resolvable:$true] %s361_s25 }
  0x23   : > { %233 = vmatpush.msra.mxu0 %v210_v3  ;;  %v201_v4 = vld [vmem:[#allocation2 + $0x38] sm:$0xff]  ;;  %485 = vmatpush.msra.mxu3 %v210_v3  ;;  %v200_v7 = vld [vmem:[#allocation2 + $0x30] sm:$0xff]  ;;  %v199_v9 = vld [vmem:[#allocation2 + $0x28] sm:$0xff]  ;;  %s360_s24 = scalar_lea.hbm %s854_s2, %s484_s17  ;;  %s349_s27 = scalar_lea.sflag [#allocation4], %s175_s4 }
  0x24   : > { %260 = vmatpush.msra.mxu1 %v201_v4  ;;  %303 = vmatpush.msra.mxu2 %v282_v2  ;;  %v280_v10 = vld [vmem:[#allocation2 + $0xa0] sm:$0xff]  ;;  %v279_v13 = vld [vmem:[#allocation2 + $0x98] sm:$0xff]  ;;  %v192_v17 = vld [vmem:[%s782_s10 + $0x8] sm:$0xff]  ;;  %s363_s26 = sshll.u32 %s360_s24, 4  ;;  %s606_s6 = scalar_lea.hbm %s854_s2, 32  ;;  %s364_s26 = int_to_ptr.hbm [resolvable:$true] %s363_s26 }
  0x25   : > { %234 = vmatpush.msra.mxu0 %v209_v5  ;;  %486 = vmatpush.msra.mxu3 %v209_v5  ;;  %v207_v11 = vld [vmem:[#allocation2 + $0x60] sm:$0xff]  ;;  %v206_v14 = vld [vmem:[#allocation2 + $0x58] sm:$0xff]  ;;  %v278_v18 = vld [vmem:[#allocation2 + $0x90] sm:$0xff]  ;;  %v286_v22 = vrot.slane %v192_v17, 2  ;;  %v216_v27 = vrot.slane %v192_v17, 1  ;;  %s600_s28 = sshra.s32 %s364_s26, 4  ;;  %s601_s28 = int_to_ptr.hbm [resolvable:$true] %s600_s28 }
  0x26   : > { %261 = vmatpush.msra.mxu1 %v200_v7  ;;  %304 = vmatpush.msra.mxu2 %v281_v6  ;;  %v198_v12 = vld [vmem:[#allocation2 + $0x20] sm:$0xff]  ;;  %v197_v16 = vld [vmem:[#allocation2 + $0x18] sm:$0xff]  ;;  %v205_v19 = vld [vmem:[#allocation2 + $0x50] sm:$0xff]  ;;  %s602_s29 = scalar_lea.hbm %s601_s28, 16  ;;  %p607_p7 = scmp.lt.s32.totalorder %s601_s28, %s854_s2 }
  0x27   : > { %235 = vmatpush.msra.mxu0 %v208_v8  ;;  %487 = vmatpush.msra.mxu3 %v208_v8  ;;  %v191_v15 = vld [vmem:[%s782_s10] sm:$0xff]  ;;  %v196_v20 = vld [vmem:[#allocation2 + $0x10] sm:$0xff]  ;;  %v277_v24 = vld [vmem:[#allocation2 + $0x88] sm:$0xff]  ;;  %p603_p1 = scmp.ne.s32.totalorder %s601_s28, %s602_s29  ;;  %p608_p8 = scmp.lt.s32.totalorder %s606_s6, %s602_s29 }
  0x28   : > { %262 = vmatpush.msra.mxu1 %v199_v9  ;;  %305 = vmatpush.msra.mxu2 %v280_v10  ;;  %v285_v21 = vrot.slane %v191_v15, 2  ;;  %v193_v23 = vld [vmem:[%s782_s10 + $0x10] sm:$0x3]  ;;  %v204_v25 = vld [vmem:[#allocation2 + $0x48] sm:$0xff]  ;;  %v215_v26 = vrot.slane %v191_v15, 1  ;;  %v276_v29 = vld [vmem:[#allocation2 + $0x80] sm:$0xff] }
  0x29   : > { %236 = vmatpush.msra.mxu0 %v207_v11  ;;  %488 = vmatpush.msra.mxu3 %v207_v11  ;;  %v195_v28 = vld [vmem:[#allocation2 + $0x8] sm:$0xff]  ;;  %v203_v30 = vld [vmem:[#allocation2 + $0x40] sm:$0xff]  ;;  %v218_v31 = vrot.slane %v193_v23, 1  ;;  %v288_v36 = vrot.slane %v193_v23, 2  ;;  %p604_p3 = pnand %p603_p1, %p753_p5  ;;  %p609_p9 = por %p608_p8, %p607_p7 }
  0x2a   : > { %263 = vmatpush.msra.mxu1 %v198_v12  ;;  %306 = vmatpush.msra.mxu2 %v279_v13  ;;  %v287_v32 = vsel %vm284_vm1, %v285_v21, %v286_v22  ;;  %v194_v33 = vld [vmem:[#allocation2] sm:$0xff]  ;;  %v217_v34 = vsel %vm214_vm2, %v215_v26, %v216_v27 }
  0x2b   : > { %237 = vmatpush.msra.mxu0 %v206_v14  ;;  %489 = vmatpush.msra.mxu3 %v206_v14  ;;  %v219_v35 = vsel %vm214_vm2, %v216_v27, %v218_v31  ;;  %v289_v37 = vsel %vm284_vm1, %v286_v22, %v288_v36  ;;  %p605_p4 = pneg %p604_p3 }
  0x2c   : > { %264 = vmatpush.msra.mxu1 %v197_v16  ;;  %307 = vmatpush.msra.mxu2 %v278_v18 }
  0x2d   : > { %238 = vmatpush.msra.mxu0 %v205_v19  ;;  %490 = vmatpush.msra.mxu3 %v205_v19  ;;  %p610_p10 = pnand %p609_p9, %p605_p4 }
  0x2e   : > { %265 = vmatpush.msra.mxu1 %v196_v20  ;;  %308 = vmatpush.msra.mxu2 %v277_v24 }
  0x2f   : > { %239 = vmatpush.msra.mxu0 %v204_v25  ;;  %491 = vmatpush.msra.mxu3 %v204_v25 }
  0x30   : > { %266 = vmatpush.msra.mxu1 %v195_v28  ;;  %309 = vmatpush.msra.mxu2 %v276_v29 }
  0x31   : > { %240 = vmatpush.msra.mxu0 %v203_v30  ;;  %475 = vmatmul.msk.f32.vlgmr.msra.gmra.mxu2 %vm220_vm3, %v287_v32 }
  0x32   : > { %267 = vmatpush.msra.mxu1 %v194_v33  ;;  %471 = vmatmul.msk.f32.vlgmr.msra.gmra.mxu0 %vm220_vm3, %v217_v34 }
  0x33   : > { %473 = vmatmul.msk.f32.vlgmr.msra.gmra.mxu1 %vm220_vm3, %v191_v15  ;;  %492 = vmatpush.msra.mxu3 %v203_v30 }
  0x34   : > { %472 = vmatmul.msk.f32.vlgmr.msra.gmra.mxu3 %vm220_vm3, %v219_v35 }
  0x39   : > { %476 = vmatmul.msk.f32.gmra.mxu2 %vm220_vm3, %v289_v37 }
  0x3b   : > { %474 = vmatmul.msk.f32.gmra.mxu1 %vm220_vm3, %v192_v17 }
  0xaf   : > { %v242_v38 = vpop.f32.mrf.mxu0 }
  0xb0   : > { %v269_v39 = vpop.f32.mrf.mxu1 }
  0xb1   : > { %v270_v40 = vadd.f32 %v269_v39, %v242_v38 }
  0xb4   : > { %v311_v41 = vpop.f32.mrf.mxu2 }
  0xb5   : > { %v317_v42 = vadd.f32 %v311_v41, %v270_v40 }
  0xb7   : > { %319 = vst.msk [vmem:[%s784_s11] sm:$0xff] %vm220_vm3, %v317_v42  ;;  %v245_v43 = vpop.f32.mrf.mxu3  ;;  %v335_v47 = vmul.f32 %v317_v42, %v317_v42  ;;  %v322_v49 = vsel %vm220_vm3, %v317_v42, 0.0 }
  0xb8   : > { %v272_v44 = vpop.f32.mrf.mxu1 }
  0xb9   : > { %v273_v45 = vadd.f32 %v272_v44, %v245_v43 }
  0xbc   : > { %v314_v46 = vpop.f32.mrf.mxu2 }
  0xbd   : > { %v318_v48 = vadd.f32 %v314_v46, %v273_v45 }
  0xbf   : > { %320 = vst.msk [vmem:[%s784_s11 + $0x8] sm:$0xff] %vm220_vm3, %v318_v48  ;;  %v323_v50 = vsel %vm220_vm3, %v318_v48, 0.0  ;;  %v336_v51 = vmul.f32 %v318_v48, %v318_v48 }
  0xc0   : > { %v324_v52 = vadd.f32 %v323_v50, %v322_v49 }
  0xc1   : > { %613 = shalt.err (!%p610_p10)
}
  0xc2   : > { %s690_s4 = smov 128   ;;  %s691_s9 = smov 8   ;;  %v337_v53 = vsel %vm220_vm3, %v335_v47, 0.0  ;;  %v338_v54 = vsel %vm220_vm3, %v336_v51, 0.0  ;;  %v325_v55 = vrot.slane %v324_v52, 4  ;;  %vm332_vm4 = vcmask 516096  }
  0xc3   : > { %498 = dma.vmem_to_hbm [thread:$0]  (%p753_p5), %s362_s25, 256, %s364_s26, %s349_s27, %s690_s4, %s690_s4, %s691_s9   ;;  %v339_v56 = vadd.f32 %v338_v54, %v337_v53  ;;  %v321_v1 = vld [vmem:[#allocation6] sm:$0x1]  ;;  %v334_v4 = vld [vmem:[#allocation6 + $0x1] sm:$0x1] }
  0xc4   : > { %v326_v57 = vadd.f32 %v325_v55, %v324_v52  ;;  %s692_s22 = smov [#allocation6]   ;;  %s378_s19 = sshll.u32 %s855_s3, 4  ;;  %s379_s19 = int_to_ptr.hbm [resolvable:$true] %s378_s19 }
  0xc5   : > { %v340_v58 = vrot.slane %v339_v56, 4  ;;  %s376_s10 = sshll.u32 %s692_s22, 4  ;;  %s377_s10 = int_to_ptr.vmem [resolvable:$true] %s376_s10 }
  0xc6   : > { %v327_v59 = vrot.slane %v326_v57, 2 }
  0xc7   : > { %v341_v60 = vadd.f32 %v340_v58, %v339_v56 }
  0xc8   : > { %v328_v61 = vadd.f32 %v327_v59, %v326_v57 }
  0xc9   : > { %v342_v62 = vrot.slane %v341_v60, 2 }
  0xca   : > { %v329_v63 = vrot.slane %v328_v61, 1 }
  0xcb   : > { %v343_v0 = vadd.f32 %v342_v62, %v341_v60 }
  0xcc   : > { %v330_v2 = vadd.f32 %v329_v63, %v328_v61 }
  0xcd   : > { %v344_v3 = vrot.slane %v343_v0, 1 }
  0xce   : > { %v331_v5 = vadd.f32 %v330_v2, %v321_v1 }
  0xcf   : > { %v345_v6 = vadd.f32 %v344_v3, %v343_v0 }
  0xd0   : > { %333 = vst.msk [vmem:[#allocation6] sm:$0x1] %vm332_vm4, %v331_v5 }
  0xd1   : > { %v346_v7 = vadd.f32 %v345_v6, %v334_v4 }
  0xd3   : > { %347 = vst.msk [vmem:[#allocation6 + $0x1] sm:$0x1] %vm332_vm4, %v346_v7 }
  0xd4   : > { %500 = dma.vmem_to_hbm [thread:$0]  (%p84_p2), %s377_s10, 32, %s379_s19, [#allocation7]  }
  0xd5   : > { %663 = dma.done.wait (%p84_p2), [#allocation7], 32  }
  0xd6   : > { %665 = vsyncadd (%p84_p2), [#allocation7], 4294967264 }
  0xd7 PF: > { %p516_p5 = scmp.ge.s32.totalorder %s684_s15, 2  ;;  %s395_s20 = sand.u32 1, %s672_s12  }
  0xd8   : > { %s396_s24 = scalar_lea.sflag [#allocation4], %s395_s20 }
  0xd9   : > { %p509_p11 = pnand %p516_p5, %p757_p6 }
  0xdb   : > { %p510_p12 = pneg %p509_p11 }
  0xdd   : > { %667 = dma.done.wait (%p510_p12), %s396_s24, 256  }
  0xde   : > { %669 = vsyncadd (%p510_p12), %s396_s24, 4294967040  ;;  %p16_p13 = scmp.ge.s32.totalorder %s738_s18, 4   ;;  %s858_s12 = smov %s676_s13 }
  0xdf   : > { %s859_s13 = smov %s680_s14  ;;  %s860_s14 = smov %s749_s21 }
  0xe0   : > { %s861_s15 = smov %s738_s18  ;;  %18 = sbr.rel (!%p16_p13) target bundleno = 5 (0x5), region = 82 }
  0xe5   :  { %402 = vsyncpa [#allocation3], 1 }
  0xe6   :  { %404 = vsyncpa [#allocation3 + $0x1], 1 }
  0xe7   :  { %405 = vsyncpa [#allocation4], 1 }
  0xe8   :  { %407 = vsyncpa [#allocation4 + $0x1], 1 }
  0xe9   :  { %408 = vsyncpa [#allocation7], 1 }

</bundles_post_ra>
